<compile_context>
chip_gen: v7x
topology: tpu7x:2x2x1
jax: 0.10.0
libtpu: 0.0.40
codegen_flags: <defaults>
</compile_context>

<pallas_src>
import functools
import math

import numpy as np
import jax
import jax.numpy as jnp
from jax.experimental import pallas as pl
from jax.experimental.pallas import tpu as pltpu

BN_EPS = 1e-5
COMPUTE_DTYPE = jnp.bfloat16   # MXU-native on v5e/v6e/v7x; accumulation stays f32
ACT_DTYPE = jnp.bfloat16       # inter-layer activation storage (halves HBM traffic)


# ---------------------------------------------------------------------------
# Fused (pre-activation -> matmul -> optional tanh) Pallas kernel
# ---------------------------------------------------------------------------
def _fused_matmul_kernel(x_ref, w_ref, ss_ref, o_ref, xact_ref, *,
                         in_relu, out_tanh):
    # Epilogue of the PREVIOUS layer (BatchNorm scale/shift + ReLU) applied to
    # the (tm, K) input tile ONCE per row tile and cached in VMEM scratch; all
    # column tiles reuse it (grid is rows-outer / columns-inner).
    @pl.when(pl.program_id(1) == 0)
    def _():
        x = x_ref[...].astype(jnp.float32)
        x = x * ss_ref[0:1, :] + ss_ref[1:2, :]
        if in_relu:
            x = jnp.maximum(x, 0.0)
        xact_ref[...] = x.astype(COMPUTE_DTYPE)
    y = jnp.dot(xact_ref[...], w_ref[...], preferred_element_type=jnp.float32)
    if out_tanh:
        y = jnp.tanh(y)
    o_ref[...] = y.astype(o_ref.dtype)


def fused_matmul(x2d, wmat, scale, shift, *, in_relu, out_tanh):
    """(M, K) @ (K, Nm) with fused input scale/shift(+ReLU) and optional tanh."""
    M, K = x2d.shape
    Nm = wmat.shape[1]
    itemsize = np.dtype(COMPUTE_DTYPE).itemsize

    # Row tile: single tile whenever M fits (weight streamed exactly once),
    # otherwise the largest power-of-two divisor of M (no wrapper-side pad).
    # Cap at 512 when K >= 1024 to stay inside v5e's 16 MiB scoped-VMEM default.
    cap = 512 if K >= 1024 else 1024
    m_aligned = -(-M // 8) * 8
    if m_aligned <= cap:
        tm = m_aligned
    else:
        tm = cap
        t = cap
        while t >= 128:
            if M % t == 0:
                tm = t
                break
            t //= 2
    Mp = pl.cdiv(M, tm) * tm
    if Mp != M:
        x2d = jnp.pad(x2d, ((0, Mp - M), (0, 0)))   # only fires for tiny M

    # Column tile: weights <= 2 MiB stay fully VMEM-resident (single column
    # tile, DMA'd once and never re-fetched); bigger weights are streamed in
    # lane-dense <=512-wide column tiles (still read once when rows == 1 tile).
    if K * Nm * itemsize <= 2 * 1024 * 1024:
        tn = Nm
    else:
        tn = Nm
        for cand in (512, 256, 128):
            if Nm % cand == 0:
                tn = cand
                break
    # TODO(synk): on v6e, pl.Buffered(3) on the weight BlockSpec would hide the
    # now-exposed bf16 weight DMA for the streamed mid layers.

    ss = jnp.stack([scale.astype(jnp.float32), shift.astype(jnp.float32)])  # (2, K)

    kernel = functools.partial(_fused_matmul_kernel,
                               in_relu=in_relu, out_tanh=out_tanh)
    out = pl.pallas_call(
        kernel,
        out_shape=jax.ShapeDtypeStruct((Mp, Nm), ACT_DTYPE),
        grid_spec=pltpu.PrefetchScalarGridSpec(
            num_scalar_prefetch=0,
            grid=(Mp // tm, Nm // tn),
            in_specs=[
                pl.BlockSpec((tm, K), lambda i, j: (i, 0)),
                pl.BlockSpec((K, tn), lambda i, j: (0, j)),
                pl.BlockSpec((2, K), lambda i, j: (0, 0)),
            ],
            out_specs=pl.BlockSpec((tm, tn), lambda i, j: (i, j)),
            scratch_shapes=[pltpu.VMEM((tm, K), COMPUTE_DTYPE)],
        ),
        compiler_params=pltpu.CompilerParams(
            # Column axis carries the cached activated-x scratch -> arbitrary;
            # row axis is independent -> parallel (v7x megacore).
            dimension_semantics=("parallel", "arbitrary")),
    )(x2d, wmat, ss)
    return out[:M] if Mp != M else out


# ---------------------------------------------------------------------------
# ConvTranspose2d = input-side matmul (Pallas) + phase-decomposed col2im (XLA)
# ---------------------------------------------------------------------------
def _col2im_generic(y_cols, N, H, W, k, s, p, C):
    """General fallback (k % s == 0): (k/s)^2 shifted adds + pixel shuffle."""
    R = k // s
    Y = y_cols.reshape(N, H, W, R, s, R, s, C)
    Hq, Wq = H + R - 1, W + R - 1
    acc = jnp.zeros((N, Hq, Wq, s, s, C), y_cols.dtype)
    for ah in range(R):
        for aw in range(R):
            piece = Y[:, :, :, ah, :, aw, :, :]
            acc = acc + jnp.pad(
                piece, ((0, 0), (ah, R - 1 - ah), (aw, R - 1 - aw),
                        (0, 0), (0, 0), (0, 0)))
    full = acc.transpose(0, 1, 3, 2, 4, 5).reshape(N, Hq * s, Wq * s, C)
    OH = (H - 1) * s + k - 2 * p
    OW = (W - 1) * s + k - 2 * p
    return full[:, p:p + OH, p:p + OW, :]


def col2im(y_cols, N, H, W, k, s, p, C):
    """Overlap-add the per-input-pixel (k, k, C) contribution patches.

    y_cols: (N*H*W, k*k*C), columns ordered (kh, kw, c); contribution of input
    pixel (h, w) at kernel position (kh, kw) lands at output
    (h*s - p + kh, w*s - p + kw).
    """
    Y = y_cols.reshape(N, H, W, k, k, C)
    if H == 1 and W == 1 and p == 0:
        # First 1x1 -> kxk layer: trivial reshape, no overlap.
        return Y.reshape(N, k, k, C)
    if s == k and p == 0:
        # Last stride-4 layer: pure pixel shuffle, no overlap-add.
        return Y.transpose(0, 1, 3, 2, 4, 5).reshape(N, H * k, W * k, C)
    if k == 4 and s == 2 and p == 1:
        # Phase-decomposed overlap-add: two 1-D shift+add passes + interleave.
        # out[2m,   :] <- Y[m, kh=1] + Y[m-1, kh=3]
        # out[2m+1, :] <- Y[m, kh=2] + Y[m+1, kh=0]   (same structure along W)
        zh = jnp.zeros((N, 1, W, k, C), Y.dtype)
        z_even = Y[:, :, :, 1] + jnp.concatenate([zh, Y[:, :-1, :, 3]], axis=1)
        z_odd = Y[:, :, :, 2] + jnp.concatenate([Y[:, 1:, :, 0], zh], axis=1)
        Z = jnp.stack([z_even, z_odd], axis=2).reshape(N, 2 * H, W, k, C)
        zw = jnp.zeros((N, 2 * H, 1, C), Y.dtype)
        o_even = Z[:, :, :, 1] + jnp.concatenate([zw, Z[:, :, :-1, 3]], axis=2)
        o_odd = Z[:, :, :, 2] + jnp.concatenate([Z[:, :, 1:, 0], zw], axis=2)
        return jnp.stack([o_even, o_odd], axis=3).reshape(N, 2 * H, 2 * W, C)
    # TODO(synk): a dedicated Pallas phase-combine kernel would remove the
    # remaining XLA passes here; kept in XLA (on bf16 data) for robustness.
    return _col2im_generic(y_cols, N, H, W, k, s, p, C)


def make_conv_transpose_weights(w_pt, k, s, p):
    """PyTorch ConvTranspose2d weight (Cin, Cout, kH, kW) -> (wmat, cfg).

    wmat: (Cin, k*k*Cout_pad), columns ordered (kh, kw, c); Cout zero-padded so
    k*k*Cout_pad is a multiple of 128 (lane-dense matmul output).
    """
    cin, cout = w_pt.shape[0], w_pt.shape[1]
    assert k % s == 0, "col2im phase decomposition assumes k % s == 0"
    unit = 128 // math.gcd(k * k, 128)
    cpad = -(-cout // unit) * unit
    wp = jnp.pad(w_pt, ((0, 0), (0, cpad - cout), (0, 0), (0, 0)))
    wmat = jnp.transpose(wp, (0, 2, 3, 1)).reshape(cin, k * k * cpad)
    cfg = (k, s, p, cin, cout, cpad)
    return wmat, cfg


def conv_transpose_layer(x_nhwc, wmat, cfg, scale, shift, *, in_relu, out_tanh):
    k, s, p, cin, cout, cpad = cfg
    N, H, W, _ = x_nhwc.shape
    x2d = x_nhwc.reshape(N * H * W, cin)
    # tanh commutes with col2im only when there is no overlap-add (k // s == 1)
    fuse_tanh = out_tanh and (k // s == 1)
    ycols = fused_matmul(x2d, wmat, scale, shift,
                         in_relu=in_relu, out_tanh=fuse_tanh)
    y = col2im(ycols, N, H, W, k, s, p, cpad)[..., :cout]
    if out_tanh and not fuse_tanh:
        y = jnp.tanh(y.astype(jnp.float32)).astype(ACT_DTYPE)
    return y


# ---------------------------------------------------------------------------
# Generator
# ---------------------------------------------------------------------------
def init_params(key, nz, ngf, nc):
    specs = [
        # (Cin,      Cout,     k, s, p)
        (nz,       ngf * 16, 4, 1, 0),
        (ngf * 16, ngf * 8,  4, 2, 1),
        (ngf * 8,  ngf * 4,  4, 2, 1),
        (ngf * 4,  ngf * 2,  4, 2, 1),
        (ngf * 2,  ngf,      4, 2, 1),
        (ngf,      nc,       4, 4, 0),
    ]
    configs, params = [], []
    for (cin, cout, k, s, p) in specs:
        key, wk = jax.random.split(key)
        # PyTorch ConvTranspose2d layout (Cin, Cout, kH, kW)
        w = jax.random.normal(wk, (cin, cout, k, k), jnp.float32) * 0.05
        wmat, cfg = make_conv_transpose_weights(w, k, s, p)
        configs.append(cfg)
        params.append({
            "wmat": wmat.astype(COMPUTE_DTYPE),           # bf16 weights
            # BatchNorm2d default init: gamma=1, beta=0
            "gamma": jnp.ones((cout,), jnp.float32),
            "beta": jnp.zeros((cout,), jnp.float32),
        })
    return tuple(configs), params


def make_generator_forward(configs):
    """configs: static Python ints (k, s, p, cin, cout, cout_pad) per layer."""
    n_layers = len(configs)

    def forward(x_nchw, params):
        x = jnp.transpose(x_nchw, (0, 2, 3, 1)).astype(jnp.float32)   # NCHW -> NHWC
        cin0 = configs[0][3]
        scale = jnp.ones((cin0,), jnp.float32)
        shift = jnp.zeros((cin0,), jnp.float32)
        in_relu = False
        for idx, cfg in enumerate(configs):
            layer = params[idx]
            last = idx == n_layers - 1
            y = conv_transpose_layer(x, layer["wmat"], cfg, scale, shift,
                                     in_relu=in_relu, out_tanh=last)
            if not last:
                # BatchNorm2d batch statistics (training mode, as in a freshly
                # constructed PyTorch module), in ONE pass over y (f32 sums).
                # The scale/shift + ReLU themselves are fused into the NEXT
                # layer's matmul epilogue.
                y32 = y.astype(jnp.float32)
                cnt = y.shape[0] * y.shape[1] * y.shape[2]
                s1 = jnp.sum(y32, axis=(0, 1, 2))
                s2 = jnp.sum(y32 * y32, axis=(0, 1, 2))
                mean = s1 / cnt
                var = jnp.maximum(s2 / cnt - mean * mean, 0.0)
                scale = layer["gamma"] * jax.lax.rsqrt(var + BN_EPS)
                shift = layer["beta"] - mean * scale
                in_relu = True
            x = y
        return jnp.transpose(x, (0, 3, 1, 2)).astype(jnp.float32)      # NHWC -> NCHW

    return forward


# ---------------------------------------------------------------------------
if __name__ == "__main__":
    # --- correctness self-check: one deconv block vs XLA conv_general_dilated ---
    ck1, ck2 = jax.random.split(jax.random.PRNGKey(42))
    cin_t, cout_t, k_t, s_t, p_t = 8, 4, 4, 2, 1
    xt = jax.random.normal(ck1, (2, 8, 8, cin_t), jnp.float32)
    wt = jax.random.normal(ck2, (cin_t, cout_t, k_t, k_t), jnp.float32) * 0.1
    wmat_t, cfg_t = make_conv_transpose_weights(wt, k_t, s_t, p_t)
    got = conv_transpose_layer(
        xt, wmat_t.astype(COMPUTE_DTYPE), cfg_t,
        jnp.ones((cin_t,), jnp.float32), jnp.zeros((cin_t,), jnp.float32),
        in_relu=False, out_tanh=False)
    # Reference from bf16-rounded inputs (kernel computes in bf16 with f32 acc).
    xt_b = xt.astype(COMPUTE_DTYPE).astype(jnp.float32)
    wt_b = wt.astype(COMPUTE_DTYPE).astype(jnp.float32)
    ref = jax.lax.conv_general_dilated(
        xt_b, jnp.transpose(wt_b[:, :, ::-1, ::-1], (2, 3, 0, 1)),
        window_strides=(1, 1), padding=[(k_t - 1 - p_t, k_t - 1 - p_t)] * 2,
        lhs_dilation=(s_t, s_t), dimension_numbers=("NHWC", "HWIO", "NHWC"),
        precision=jax.lax.Precision.HIGHEST)
    err = float(jnp.max(jnp.abs(got.astype(jnp.float32) - ref)))
    assert got.shape == ref.shape and err < 5e-2, (got.shape, ref.shape, err)

    # --- full generator forward at small DCGAN shapes ---
    batch, nz, ngf, nc = 2, 16, 4, 3
    key = jax.random.PRNGKey(0)
    key, xk = jax.random.split(key)
    x = jax.random.normal(xk, (batch, nz, 1, 1), jnp.float32)   # latent (N, nz, 1, 1)
    configs, params = init_params(key, nz, ngf, nc)

    forward = jax.jit(make_generator_forward(configs))
    out = jax.block_until_ready(forward(x, params))

    assert out.shape == (batch, nc, 256, 256), out.shape
    assert bool(jnp.all(jnp.isfinite(out)))
    assert bool(jnp.all(jnp.abs(out) <= 1.0 + 1e-6))   # tanh output range
    print("KERNEL_OK")
</pallas_src>

<mosaic_0001>
module attributes {stable_mosaic.version = 11 : i64} {
  func.func @_fused_matmul_kernel(%arg0: i32, %arg1: i32, %arg2: memref<128x8xf32, #tpu.memory_space<vmem>>, %arg3: memref<8x128xbf16, #tpu.memory_space<vmem>>, %arg4: memref<2x8xf32, #tpu.memory_space<vmem>>, %arg5: memref<128x128xbf16, #tpu.memory_space<vmem>>, %arg6: memref<128x8xbf16, #tpu.memory_space<vmem>>) attributes {dimension_semantics = [#tpu.dimension_semantics<parallel>, #tpu.dimension_semantics<arbitrary>], iteration_bounds = array<i64: 1, 1>, scalar_prefetch = 0 : i64, scratch_operands = 1 : i64, tpu.core_type = #tpu.core_type<tc>, window_params = [{transform_indices = @transform_0, window_bounds = array<i64: 128, 8>}, {transform_indices = @transform_1, window_bounds = array<i64: 8, 128>}, {pipeline_mode = #tpu.pipeline_mode<synchronous>, transform_indices = @transform_2, window_bounds = array<i64: 2, 8>}, {transform_indices = @transform_3, window_bounds = array<i64: 128, 128>}]} {
    %c0_i32 = arith.constant 0 : i32
    %0 = arith.cmpi eq, %arg1, %c0_i32 : i32
    %1 = arith.extui %0 : i1 to i32
    %c0_i32_0 = arith.constant 0 : i32
    %2 = arith.cmpi ne, %1, %c0_i32_0 : i32
    scf.if %2 {
      %c0_6 = arith.constant 0 : index
      %c0_7 = arith.constant 0 : index
      %8 = vector.load %arg2[%c0_6, %c0_7] : memref<128x8xf32, #tpu.memory_space<vmem>>, vector<128x8xf32>
      %c0_8 = arith.constant 0 : index
      %c0_9 = arith.constant 0 : index
      %9 = vector.load %arg4[%c0_8, %c0_9] : memref<2x8xf32, #tpu.memory_space<vmem>>, vector<1x8xf32>
      %10 = vector.broadcast %9 : vector<1x8xf32> to vector<128x8xf32>
      %11 = arith.mulf %8, %10 : vector<128x8xf32>
      %c1 = arith.constant 1 : index
      %c0_10 = arith.constant 0 : index
      %12 = vector.load %arg4[%c1, %c0_10] : memref<2x8xf32, #tpu.memory_space<vmem>>, vector<1x8xf32>
      %13 = vector.broadcast %12 : vector<1x8xf32> to vector<128x8xf32>
      %14 = arith.addf %11, %13 : vector<128x8xf32>
      %15 = arith.truncf %14 : vector<128x8xf32> to vector<128x8xbf16>
      %c0_11 = arith.constant 0 : index
      %c0_12 = arith.constant 0 : index
      %16 = vector.load %arg6[%c0_11, %c0_12] : memref<128x8xbf16, #tpu.memory_space<vmem>>, vector<128x8xbf16>
      tpu.vector_store %arg6[%c0_11, %c0_12], %15 {strides = array<i32>} : memref<128x8xbf16, #tpu.memory_space<vmem>>, vector<128x8xbf16>,
    } else {
    }
    %c0 = arith.constant 0 : index
    %c0_1 = arith.constant 0 : index
    %3 = vector.load %arg6[%c0, %c0_1] : memref<128x8xbf16, #tpu.memory_space<vmem>>, vector<128x8xbf16>
    %c0_2 = arith.constant 0 : index
    %c0_3 = arith.constant 0 : index
    %4 = vector.load %arg3[%c0_2, %c0_3] : memref<8x128xbf16, #tpu.memory_space<vmem>>, vector<8x128xbf16>
    %cst = arith.constant dense<0.000000e+00> : vector<128x128xf32>
    %5 = tpu.matmul %3, %4, %cst {dimension_numbers = #tpu.dot_dimension_numbers<[1], [0], [0], [1], [0, 0, 1, 1], [], []>} : vector<128x8xbf16>, vector<8x128xbf16>, vector<128x128xf32> -> vector<128x128xf32>
    %6 = arith.truncf %5 : vector<128x128xf32> to vector<128x128xbf16>
    %c0_4 = arith.constant 0 : index
    %c0_5 = arith.constant 0 : index
    %7 = vector.load %arg5[%c0_4, %c0_5] : memref<128x128xbf16, #tpu.memory_space<vmem>>, vector<128x128xbf16>
    tpu.vector_store %arg5[%c0_4, %c0_5], %6 {strides = array<i32>} : memref<128x128xbf16, #tpu.memory_space<vmem>>, vector<128x128xbf16>,
    return
  }
  func.func @transform_0(%arg0: i32, %arg1: i32) -> (i32, i32) {
    %c0_i32 = arith.constant 0 : i32
    %c0_i32_0 = arith.constant 0 : i32
    return %arg0, %c0_i32 : i32, i32
  }
  func.func @transform_1(%arg0: i32, %arg1: i32) -> (i32, i32) {
    %c0_i32 = arith.constant 0 : i32
    %c0_i32_0 = arith.constant 0 : i32
    return %c0_i32, %arg1 : i32, i32
  }
  func.func @transform_2(%arg0: i32, %arg1: i32) -> (i32, i32) {
    %c0_i32 = arith.constant 0 : i32
    %c0_i32_0 = arith.constant 0 : i32
    %c0_i32_1 = arith.constant 0 : i32
    return %c0_i32, %c0_i32_0 : i32, i32
  }
  func.func @transform_3(%arg0: i32, %arg1: i32) -> (i32, i32) {
    %c0_i32 = arith.constant 0 : i32
    return %arg0, %arg1 : i32, i32
  }
}

</mosaic_0001>

<bundles_post_ra>
// kernel: tpu_custom_call.1
= control target key start
LH: loop header
LB: loop body
LE: loop exit
PB: predicated region body
PF: predicated region fallthrough
CT: control target
= control target key end

     0   :  { %vm129_vm0 = vcmask 1043456   ;;  %vm86_vm1 = vcmask 64512   ;;  %s581_s0 = inlined_call_operand.vmem [shape: f32[128,8], index: 0, kind: input, shape index: {}]   ;;  %s582_s1 = inlined_call_operand.vmem [shape: bf16[8,128], index: 1, kind: input, shape index: {}]   ;;  %s583_s2 = inlined_call_operand.vmem [shape: f32[2,8], index: 2, kind: input, shape index: {}]   ;;  %s584_s3 = inlined_call_operand.hbm [shape: bf16[128,128], index: 3, kind: output, shape index: {}]  }
   0x1   :  { %v103_v0 = vld [vmem:[%s582_s1] sm:$0xf]  ;;  %v21_v2 = vld [vmem:[%s581_s0 + $0x8] sm:$0xff]  ;;  %v22_v11 = vld [vmem:[%s581_s0 + $0x10] sm:$0xff] }
   0x2   :  { %v20_v1 = vld [vmem:[%s581_s0] sm:$0xff]  ;;  %444 = vmatprep.subr.msk.bf16.mxu0 %vm129_vm0, %v103_v0  ;;  %445 = vmatprep.subr.msk.bf16.mxu1 %vm129_vm0, %v103_v0  ;;  %v131_v3 = vsel %vm129_vm0, %v103_v0, 0  ;;  %v29_v9 = vld [vmem:[%s581_s0 + $0x48] sm:$0xff]  ;;  %v23_v12 = vld [vmem:[%s581_s0 + $0x18] sm:$0xff] }
   0x3   :  { %v326_v4 = vld [vmem:[%s583_s2] ss:$0 sm:$0xff]  ;;  %v327_v5 = vld [vmem:[%s583_s2 + $0x1] ss:$0 sm:$0xff]  ;;  %425 = vmatpush3.bf16.msra.mxu0 %v131_v3  ;;  %443 = vmatpush3.bf16.msra.mxu1 %v131_v3  ;;  %v30_v16 = vld [vmem:[%s581_s0 + $0x50] sm:$0xff] }
   0x4   :  { %v28_v6 = vld [vmem:[%s581_s0 + $0x40] sm:$0xff]  ;;  %v41_v7 = vmul.f32 %v326_v4, %v20_v1  ;;  %v42_v8 = vmul.f32 %v326_v4, %v21_v2  ;;  %v50_v13 = vmul.f32 %v326_v4, %v29_v9  ;;  %v43_v14 = vmul.f32 %v326_v4, %v22_v11  ;;  %v31_v17 = vld [vmem:[%s581_s0 + $0x58] sm:$0xff]  ;;  %v25_v23 = vld [vmem:[%s581_s0 + $0x28] sm:$0xff] }
   0x5   :  { %v49_v10 = vmul.f32 %v326_v4, %v28_v6  ;;  %v44_v15 = vmul.f32 %v326_v4, %v23_v12  ;;  %v24_v18 = vld [vmem:[%s581_s0 + $0x20] sm:$0xff]  ;;  %v51_v22 = vmul.f32 %v326_v4, %v30_v16  ;;  %v52_v28 = vmul.f32 %v326_v4, %v31_v17  ;;  %v33_v29 = vld [vmem:[%s581_s0 + $0x68] sm:$0xff]  ;;  %v26_v30 = vld [vmem:[%s581_s0 + $0x30] sm:$0xff] }
   0x6   :  { %v62_v19 = vadd.f32 %v327_v5, %v41_v7  ;;  %v63_v20 = vadd.f32 %v327_v5, %v42_v8  ;;  %v32_v24 = vld [vmem:[%s581_s0 + $0x60] sm:$0xff]  ;;  %v71_v25 = vadd.f32 %v327_v5, %v50_v13  ;;  %v64_v26 = vadd.f32 %v327_v5, %v43_v14  ;;  %v27_v35 = vld [vmem:[%s581_s0 + $0x38] sm:$0xff]  ;;  %v34_v36 = vld [vmem:[%s581_s0 + $0x70] sm:$0xff] }
   0x7   :  { %v70_v21 = vadd.f32 %v327_v5, %v49_v10  ;;  %v65_v27 = vadd.f32 %v327_v5, %v44_v15  ;;  %v72_v32 = vadd.f32 %v327_v5, %v51_v22  ;;  %v45_v33 = vmul.f32 %v326_v4, %v24_v18 }
   0x8   :  { %v78_v31 = vpack.c.bf16 %v63_v20, %v62_v19  ;;  %v46_v34 = vmul.f32 %v326_v4, %v25_v23 }
   0x9   :  { %8 = vsyncpa [#allocation4], 0  ;;  %v82_v37 = vpack.c.bf16 %v71_v25, %v70_v21  ;;  %v79_v38 = vpack.c.bf16 %v65_v27, %v64_v26  ;;  %v73_v39 = vadd.f32 %v327_v5, %v52_v28  ;;  %v53_v40 = vmul.f32 %v326_v4, %v32_v24  ;;  %v35_v41 = vld [vmem:[%s581_s0 + $0x78] sm:$0xff]  ;;  %s473_s0 = smov [#allocation3]  }
   0xa   :  { %87 = vst.msk [vmem:[#allocation2] sm:$0xff] %vm86_vm1, %v78_v31  ;;  %v66_v42 = vadd.f32 %v327_v5, %v45_v33  ;;  %v67_v43 = vadd.f32 %v327_v5, %v46_v34  ;;  %v54_v44 = vmul.f32 %v326_v4, %v33_v29  ;;  %v47_v45 = vmul.f32 %v326_v4, %v26_v30  ;;  %s315_s21 = sshll.u32 %s473_s0, 4  ;;  %s316_s21 = int_to_ptr.vmem [resolvable:$true] %s315_s21 }
   0xb   :  { %91 = vst.msk [vmem:[#allocation2 + $0x20] sm:$0xff] %vm86_vm1, %v82_v37  ;;  %88 = vst.msk [vmem:[#allocation2 + $0x8] sm:$0xff] %vm86_vm1, %v79_v38  ;;  %v83_v46 = vpack.c.bf16 %v73_v39, %v72_v32  ;;  %v74_v47 = vadd.f32 %v327_v5, %v53_v40  ;;  %v48_v48 = vmul.f32 %v326_v4, %v27_v35  ;;  %s449_s1 = scalar_lea.vmem %s316_s21, 1024  ;;  %p454_p1 = scmp.lt.s32.totalorder %s316_s21, %s316_s21 }
   0xc   :  { %v55_v49 = vmul.f32 %v326_v4, %v34_v36  ;;  %v80_v50 = vpack.c.bf16 %v67_v43, %v66_v42  ;;  %v75_v51 = vadd.f32 %v327_v5, %v54_v44  ;;  %v68_v52 = vadd.f32 %v327_v5, %v47_v45  ;;  %p450_p0 = scmp.ne.s32.totalorder %s316_s21, %s449_s1  ;;  %p455_p2 = scmp.lt.s32.totalorder %s449_s1, %s449_s1 }
   0xd   :  { %v56_v53 = vmul.f32 %v326_v4, %v35_v41  ;;  %92 = vst.msk [vmem:[#allocation2 + $0x28] sm:$0xff] %vm86_vm1, %v83_v46  ;;  %v69_v54 = vadd.f32 %v327_v5, %v48_v48 }
   0xe   :  { %v76_v55 = vadd.f32 %v327_v5, %v55_v49  ;;  %89 = vst.msk [vmem:[#allocation2 + $0x10] sm:$0xff] %vm86_vm1, %v80_v50  ;;  %v84_v56 = vpack.c.bf16 %v75_v51, %v74_v47  ;;  %p456_p3 = por %p455_p2, %p454_p1 }
   0xf   :  { %v77_v57 = vadd.f32 %v327_v5, %v56_v53  ;;  %v81_v58 = vpack.c.bf16 %v69_v54, %v68_v52 }
  0x10   :  { %93 = vst.msk [vmem:[#allocation2 + $0x30] sm:$0xff] %vm86_vm1, %v84_v56  ;;  %p457_p4 = pnand %p456_p3, %p450_p0 }
  0x11   :  { %v85_v59 = vpack.c.bf16 %v77_v57, %v76_v55  ;;  %v95_v60 = vld [vmem:[#allocation2] sm:$0xff]  ;;  %90 = vst.msk [vmem:[#allocation2 + $0x18] sm:$0xff] %vm86_vm1, %v81_v58 }
  0x12   :  { %426 = vmatprep.mubr.msk.bf16.mxu0 %vm86_vm1, %v95_v60  ;;  %v99_v61 = vld [vmem:[#allocation2 + $0x20] sm:$0xff]  ;;  %v96_v62 = vld [vmem:[#allocation2 + $0x8] sm:$0xff] }
  0x13   :  { %94 = vst.msk [vmem:[#allocation2 + $0x38] sm:$0xff] %vm86_vm1, %v85_v59  ;;  %434 = vmatprep.mubr.msk.bf16.mxu1 %vm86_vm1, %v99_v61  ;;  %427 = vmatmul.mubr.msk.bf16.vlgmr.msra.gmra.mrb[0].mxu0 %vm86_vm1, %v96_v62 }
  0x14   :  { %v100_v63 = vld [vmem:[#allocation2 + $0x28] sm:$0xff] }
  0x15   :  { %435 = vmatmul.mubr.msk.bf16.vlgmr.msra.gmra.mrb[0].mxu1 %vm86_vm1, %v100_v63  ;;  %v97_v0 = vld [vmem:[#allocation2 + $0x10] sm:$0xff] }
  0x16   :  { %430 = vmatprep.mubr.msk.bf16.mxu0 %vm86_vm1, %v97_v0 }
  0x17   :  { %v101_v1 = vld [vmem:[#allocation2 + $0x30] sm:$0xff] }
  0x18   :  { %438 = vmatprep.mubr.msk.bf16.mxu1 %vm86_vm1, %v101_v1  ;;  %v98_v2 = vld [vmem:[#allocation2 + $0x18] sm:$0xff] }
  0x1a   :  { %v102_v3 = vld [vmem:[#allocation2 + $0x38] sm:$0xff] }
  0x1b   :  { %431 = vmatmul.mubr.msk.bf16.gmra.mrb[4].mxu0 %vm86_vm1, %v98_v2 }
  0x1d   :  { %439 = vmatmul.mubr.msk.bf16.gmra.mrb[4].mxu1 %vm86_vm1, %v102_v3 }
  0xe6   :  { %v428_v4 = vpop.f32.mrb[0].mxu0 }
  0xe7   :  { %v167_v5 = vpop.f32.mrb[1].mxu0 }
  0xe8   :  { %v436_v6 = vpop.f32.mrb[0].mxu1  ;;  %v429_v7 = vpop.f32.mrb[2].mxu0 }
  0xe9   :  { %v199_v8 = vpop.f32.mrb[1].mxu1  ;;  %v376_v9 = vpack.c.bf16 %v429_v7, %v428_v4  ;;  %v170_v10 = vpop.f32.mrb[3].mxu0 }
  0xea   :  { %v437_v11 = vpop.f32.mrb[2].mxu1  ;;  %v371_v12 = vpack.c.bf16 %v170_v10, %v167_v5 }
  0xeb   :  { %408 = vst [vmem:[#allocation3 + $0x8] sm:$0xff] %v376_v9   ;;  %v396_v13 = vpack.c.bf16 %v437_v11, %v436_v6  ;;  %v202_v14 = vpop.f32.mrb[3].mxu1 }
  0xec   :  { %372 = vst [vmem:[#allocation3] sm:$0xff] %v371_v12   ;;  %v391_v15 = vpack.c.bf16 %v202_v14, %v199_v8 }
  0xed   :  { %412 = vst [vmem:[#allocation3 + $0x28] sm:$0xff] %v396_v13  }
  0xee   :  { %411 = vst [vmem:[#allocation3 + $0x20] sm:$0xff] %v391_v15   ;;  %v432_v16 = vpop.f32.mrb[4].mxu0 }
  0xef   :  { %v183_v17 = vpop.f32.mrb[5].mxu0 }
  0xf0   :  { %v440_v18 = vpop.f32.mrb[4].mxu1  ;;  %v433_v19 = vpop.f32.mrb[6].mxu0 }
  0xf1   :  { %v215_v20 = vpop.f32.mrb[5].mxu1  ;;  %v386_v21 = vpack.c.bf16 %v433_v19, %v432_v16  ;;  %v186_v22 = vpop.f32.mrb[7].mxu0 }
  0xf2   :  { %v441_v23 = vpop.f32.mrb[6].mxu1  ;;  %v381_v24 = vpack.c.bf16 %v186_v22, %v183_v17 }
  0xf3   :  { %410 = vst [vmem:[#allocation3 + $0x18] sm:$0xff] %v386_v21   ;;  %v406_v25 = vpack.c.bf16 %v441_v23, %v440_v18  ;;  %v218_v26 = vpop.f32.mrb[7].mxu1 }
  0xf4   :  { %409 = vst [vmem:[#allocation3 + $0x10] sm:$0xff] %v381_v24   ;;  %v401_v27 = vpack.c.bf16 %v218_v26, %v215_v20 }
  0xf5   :  { %414 = vst [vmem:[#allocation3 + $0x38] sm:$0xff] %v406_v25  }
  0xf6   :  { %413 = vst [vmem:[#allocation3 + $0x30] sm:$0xff] %v401_v27  }
  0xf7   :  { %460 = shalt.err (!%p457_p4)
}
  0xf8   :  { %s461_s24 = scalar_lea.hbm %s584_s3, 1024 }
  0xf9   :  { %p462_p5 = scmp.ne.s32.totalorder %s584_s3, %s461_s24  ;;  %p465_p6 = scmp.lt.u32.totalorder %s461_s24, %s584_s3 }
  0xfb   :  { %p467_p7 = pnand %p465_p6, %p462_p5 }
  0xfd   :  { %470 = shalt.err (!%p467_p7)
}
  0xfe   :  { %s474_s2 = smov 64   ;;  %s475_s29 = smov 4  }
  0xff   :  { %321 = dma.vmem_to_hbm [thread:$0]  %s316_s21, 1024, %s584_s3, [#allocation4], %s474_s2, %s474_s2, %s475_s29  }
 0x100   :  { %471 = dma.done.wait [#allocation4], 1024  }
 0x101   :  { %472 = vsyncadd [#allocation4], 4294966272 }
 0x102   :  { %325 = vsyncpa [#allocation4], 1 }

</bundles_post_ra>
